<compile_context>
chip_gen: v7x
topology: tpu7x:2x2x1
jax: 0.10.0
libtpu: 0.0.40
codegen_flags: <defaults>
</compile_context>

<pallas_src>
import jax
import jax.numpy as jnp
from jax.experimental import pallas as pl
from jax.experimental.pallas import tpu as pltpu

_F_IN = 13      # input features
_H = 65         # hidden features (fc1 / fc2)
_F_OUT = 105    # output features
_LANES = 128    # lane-padded width for the hidden layers
_MAX_TB = 8192  # cap so double-buffered tiles fit v7x's 64 MiB/TC with headroom


def _round_up(n, m):
    return ((n + m - 1) // m) * m


def _mlp_kernel(x_ref, w1_ref, b1_ref, w2_ref, b2_ref, w3_ref, b3_ref, o_ref):
    # In-kernel operand cast (f32 -> bf16): saves a separate wrapper HBM pass.
    x = x_ref[...].astype(w1_ref.dtype)
    # fc1 + ReLU   (MXU matmul, f32 accumulation; bias add / ReLU stay f32)
    h1 = jnp.dot(x, w1_ref[...], preferred_element_type=jnp.float32)
    h1 = jnp.maximum(h1 + b1_ref[...], 0.0)
    # fc2 + ReLU
    h2 = jnp.dot(h1.astype(w2_ref.dtype), w2_ref[...],
                 preferred_element_type=jnp.float32)
    h2 = jnp.maximum(h2 + b2_ref[...], 0.0)
    # fc3 (no activation).  w3 is padded only on the contraction dim, so the
    # result is already 105-wide and stores straight into the (tb, 105) block.
    h3 = jnp.dot(h2.astype(w3_ref.dtype), w3_ref[...],
                 preferred_element_type=jnp.float32)
    o_ref[...] = (h3 + b3_ref[...]).astype(o_ref.dtype)


def prepare_params(params, compute_dtype=jnp.bfloat16):
    """One-time zero-padding / bf16 cast of the weights (cache across calls).

    params weights are stored [in, out] (transpose of nn.Linear storage), so
    the kernel computes y = x @ W_T + b — identical math to the PyTorch Net.
    """
    f32 = jnp.float32
    w1 = jnp.zeros((_F_IN, _LANES), f32).at[:, :_H].set(params["w1"])
    w2 = jnp.zeros((_LANES, _LANES), f32).at[:_H, :_H].set(params["w2"])
    w3 = jnp.zeros((_LANES, _F_OUT), f32).at[:_H, :].set(params["w3"])
    b1 = jnp.zeros((1, _LANES), f32).at[0, :_H].set(params["b1"])
    b2 = jnp.zeros((1, _LANES), f32).at[0, :_H].set(params["b2"])
    b3 = params["b3"].astype(f32).reshape(1, _F_OUT)
    return {"w1": w1.astype(compute_dtype), "b1": b1,
            "w2": w2.astype(compute_dtype), "b2": b2,
            "w3": w3.astype(compute_dtype), "b3": b3}


def _pick_batch_tile(batch, tb):
    tb = min(tb, _MAX_TB)
    if batch <= 8:
        return batch                      # block == full array dim (valid spec)
    # Multiple of 8 (sublane) and never larger than the array's batch dim;
    # the ragged tail is handled by Pallas partial-block masking.
    return max(8, min(_round_up(tb, 8), (batch // 8) * 8))


def blerssi_net_forward(x, prepared, *, tb=4096, out_dtype=jnp.float32):
    """Forward pass of the 13 -> 65 -> 65 -> 105 MLP as one fused Pallas kernel.

    x: [B, 13] float32
    prepared: output of prepare_params() (padded bf16 weights, f32 biases)
    returns: [B, 105] out_dtype
    """
    B = x.shape[0]
    assert x.shape[1] == _F_IN

    tb_eff = _pick_batch_tile(B, tb)
    grid = (pl.cdiv(B, tb_eff),)

    const = lambda i: (0, 0)   # weights/biases: same block every step -> stay VMEM-resident
    return pl.pallas_call(
        _mlp_kernel,
        out_shape=jax.ShapeDtypeStruct((B, _F_OUT), out_dtype),
        grid_spec=pltpu.PrefetchScalarGridSpec(
            num_scalar_prefetch=0,
            grid=grid,
            in_specs=[
                pl.BlockSpec((tb_eff, _F_IN), lambda i: (i, 0)),   # x tile (raw f32)
                pl.BlockSpec((_F_IN, _LANES), const),              # w1 [13,128]
                pl.BlockSpec((1, _LANES), const),                  # b1 [1,128]
                pl.BlockSpec((_LANES, _LANES), const),             # w2 [128,128]
                pl.BlockSpec((1, _LANES), const),                  # b2 [1,128]
                pl.BlockSpec((_LANES, _F_OUT), const),             # w3 [128,105]
                pl.BlockSpec((1, _F_OUT), const),                  # b3 [1,105]
            ],
            out_specs=pl.BlockSpec((tb_eff, _F_OUT), lambda i: (i, 0)),
        ),
        compiler_params=pltpu.CompilerParams(
            dimension_semantics=("parallel",),   # shard batch axis across TCs (v7x)
        ),
    )(x, prepared["w1"], prepared["b1"], prepared["w2"], prepared["b2"],
      prepared["w3"], prepared["b3"])


def init_params(key):
    """Deterministic init mirroring nn.Linear shapes (weights stored [in, out])."""
    keys = jax.random.split(key, 6)

    def linear(kw, kb, fan_in, fan_out):
        bound = 1.0 / jnp.sqrt(fan_in)
        w = jax.random.uniform(kw, (fan_in, fan_out), jnp.float32, -bound, bound)
        b = jax.random.uniform(kb, (fan_out,), jnp.float32, -bound, bound)
        return w, b

    w1, b1 = linear(keys[0], keys[1], _F_IN, _H)
    w2, b2 = linear(keys[2], keys[3], _H, _H)
    w3, b3 = linear(keys[4], keys[5], _H, _F_OUT)
    return {"w1": w1, "b1": b1, "w2": w2, "b2": b2, "w3": w3, "b3": b3}


def _reference(x, params, compute_dtype=jnp.bfloat16):
    """Plain-JAX reference mirroring the kernel's bf16-operand / f32-accum math."""
    f32 = jnp.float32
    w1 = params["w1"].astype(compute_dtype).astype(f32)
    w2 = params["w2"].astype(compute_dtype).astype(f32)
    w3 = params["w3"].astype(compute_dtype).astype(f32)
    xc = x.astype(compute_dtype).astype(f32)
    h1 = jnp.maximum(xc @ w1 + params["b1"], 0.0)
    h1 = h1.astype(compute_dtype).astype(f32)
    h2 = jnp.maximum(h1 @ w2 + params["b2"], 0.0)
    h2 = h2.astype(compute_dtype).astype(f32)
    return h2 @ w3 + params["b3"]


if __name__ == "__main__":
    key = jax.random.PRNGKey(0)
    k_params, k_x = jax.random.split(key)
    params = init_params(k_params)
    prepared = prepare_params(params)          # one-time weight prep, reused below

    # Small single-tile smoke test.
    B = 8
    x = jax.random.normal(k_x, (B, _F_IN), dtype=jnp.float32)
    out = jax.block_until_ready(blerssi_net_forward(x, prepared))
    assert out.shape == (B, _F_OUT)
    assert jnp.allclose(out, _reference(x, params), atol=2e-3, rtol=2e-3)

    # Multi-tile path: grid > 1 with a ragged batch tail (tests Pallas
    # partial-block handling; no wrapper pad/slice involved).
    B2 = 300
    x2 = jax.random.normal(jax.random.PRNGKey(1), (B2, _F_IN), dtype=jnp.float32)
    out2 = jax.block_until_ready(blerssi_net_forward(x2, prepared, tb=128))
    assert out2.shape == (B2, _F_OUT)
    assert jnp.allclose(out2, _reference(x2, params), atol=2e-3, rtol=2e-3)

    print("KERNEL_OK")
</pallas_src>

<mosaic_0001>
module attributes {stable_mosaic.version = 11 : i64} {
  func.func @_mlp_kernel(%arg0: i32, %arg1: memref<8x13xf32, #tpu.memory_space<vmem>>, %arg2: memref<13x128xbf16, #tpu.memory_space<vmem>>, %arg3: memref<1x128xf32, #tpu.memory_space<vmem>>, %arg4: memref<128x128xbf16, #tpu.memory_space<vmem>>, %arg5: memref<1x128xf32, #tpu.memory_space<vmem>>, %arg6: memref<128x105xbf16, #tpu.memory_space<vmem>>, %arg7: memref<1x105xf32, #tpu.memory_space<vmem>>, %arg8: memref<8x105xf32, #tpu.memory_space<vmem>>) attributes {dimension_semantics = [#tpu.dimension_semantics<parallel>], iteration_bounds = array<i64: 1>, scalar_prefetch = 0 : i64, scratch_operands = 0 : i64, tpu.core_type = #tpu.core_type<tc>, window_params = [{transform_indices = @transform_0, window_bounds = array<i64: 8, 13>}, {pipeline_mode = #tpu.pipeline_mode<synchronous>, transform_indices = @transform_1, window_bounds = array<i64: 13, 128>}, {pipeline_mode = #tpu.pipeline_mode<synchronous>, transform_indices = @transform_2, window_bounds = array<i64: 1, 128>}, {pipeline_mode = #tpu.pipeline_mode<synchronous>, transform_indices = @transform_3, window_bounds = array<i64: 128, 128>}, {pipeline_mode = #tpu.pipeline_mode<synchronous>, transform_indices = @transform_4, window_bounds = array<i64: 1, 128>}, {pipeline_mode = #tpu.pipeline_mode<synchronous>, transform_indices = @transform_5, window_bounds = array<i64: 128, 105>}, {pipeline_mode = #tpu.pipeline_mode<synchronous>, transform_indices = @transform_6, window_bounds = array<i64: 1, 105>}, {transform_indices = @transform_7, window_bounds = array<i64: 8, 105>}]} {
    %c0 = arith.constant 0 : index
    %c0_0 = arith.constant 0 : index
    %0 = vector.load %arg1[%c0, %c0_0] : memref<8x13xf32, #tpu.memory_space<vmem>>, vector<8x13xf32>
    %1 = arith.truncf %0 : vector<8x13xf32> to vector<8x13xbf16>
    %c0_1 = arith.constant 0 : index
    %c0_2 = arith.constant 0 : index
    %2 = vector.load %arg2[%c0_1, %c0_2] : memref<13x128xbf16, #tpu.memory_space<vmem>>, vector<13x128xbf16>
    %cst = arith.constant dense<0.000000e+00> : vector<8x128xf32>
    %3 = tpu.matmul %1, %2, %cst {dimension_numbers = #tpu.dot_dimension_numbers<[1], [0], [0], [1], [0, 0, 1, 1], [], []>} : vector<8x13xbf16>, vector<13x128xbf16>, vector<8x128xf32> -> vector<8x128xf32>
    %c0_3 = arith.constant 0 : index
    %c0_4 = arith.constant 0 : index
    %4 = vector.load %arg3[%c0_3, %c0_4] : memref<1x128xf32, #tpu.memory_space<vmem>>, vector<1x128xf32>
    %5 = vector.broadcast %4 : vector<1x128xf32> to vector<8x128xf32>
    %6 = arith.addf %3, %5 : vector<8x128xf32>
    %cst_5 = arith.constant 0.000000e+00 : f32
    %7 = vector.broadcast %cst_5 : f32 to vector<8x128xf32>
    %8 = arith.maximumf %6, %7 : vector<8x128xf32>
    %9 = arith.truncf %8 : vector<8x128xf32> to vector<8x128xbf16>
    %c0_6 = arith.constant 0 : index
    %c0_7 = arith.constant 0 : index
    %10 = vector.load %arg4[%c0_6, %c0_7] : memref<128x128xbf16, #tpu.memory_space<vmem>>, vector<128x128xbf16>
    %cst_8 = arith.constant dense<0.000000e+00> : vector<8x128xf32>
    %11 = tpu.matmul %9, %10, %cst_8 {dimension_numbers = #tpu.dot_dimension_numbers<[1], [0], [0], [1], [0, 0, 1, 1], [], []>} : vector<8x128xbf16>, vector<128x128xbf16>, vector<8x128xf32> -> vector<8x128xf32>
    %c0_9 = arith.constant 0 : index
    %c0_10 = arith.constant 0 : index
    %12 = vector.load %arg5[%c0_9, %c0_10] : memref<1x128xf32, #tpu.memory_space<vmem>>, vector<1x128xf32>
    %13 = vector.broadcast %12 : vector<1x128xf32> to vector<8x128xf32>
    %14 = arith.addf %11, %13 : vector<8x128xf32>
    %cst_11 = arith.constant 0.000000e+00 : f32
    %15 = vector.broadcast %cst_11 : f32 to vector<8x128xf32>
    %16 = arith.maximumf %14, %15 : vector<8x128xf32>
    %17 = arith.truncf %16 : vector<8x128xf32> to vector<8x128xbf16>
    %c0_12 = arith.constant 0 : index
    %c0_13 = arith.constant 0 : index
    %18 = vector.load %arg6[%c0_12, %c0_13] : memref<128x105xbf16, #tpu.memory_space<vmem>>, vector<128x105xbf16>
    %cst_14 = arith.constant dense<0.000000e+00> : vector<8x105xf32>
    %19 = tpu.matmul %17, %18, %cst_14 {dimension_numbers = #tpu.dot_dimension_numbers<[1], [0], [0], [1], [0, 0, 1, 1], [], []>} : vector<8x128xbf16>, vector<128x105xbf16>, vector<8x105xf32> -> vector<8x105xf32>
    %c0_15 = arith.constant 0 : index
    %c0_16 = arith.constant 0 : index
    %20 = vector.load %arg7[%c0_15, %c0_16] : memref<1x105xf32, #tpu.memory_space<vmem>>, vector<1x105xf32>
    %21 = vector.broadcast %20 : vector<1x105xf32> to vector<8x105xf32>
    %22 = arith.addf %19, %21 : vector<8x105xf32>
    %c0_17 = arith.constant 0 : index
    %c0_18 = arith.constant 0 : index
    %23 = vector.load %arg8[%c0_17, %c0_18] : memref<8x105xf32, #tpu.memory_space<vmem>>, vector<8x105xf32>
    tpu.vector_store %arg8[%c0_17, %c0_18], %22 {strides = array<i32>} : memref<8x105xf32, #tpu.memory_space<vmem>>, vector<8x105xf32>,
    return
  }
  func.func @transform_0(%arg0: i32) -> (i32, i32) {
    %c0_i32 = arith.constant 0 : i32
    %c0_i32_0 = arith.constant 0 : i32
    return %arg0, %c0_i32 : i32, i32
  }
  func.func @transform_1(%arg0: i32) -> (i32, i32) {
    %c0_i32 = arith.constant 0 : i32
    %c0_i32_0 = arith.constant 0 : i32
    %c0_i32_1 = arith.constant 0 : i32
    return %c0_i32, %c0_i32_0 : i32, i32
  }
  func.func @transform_2(%arg0: i32) -> (i32, i32) {
    %c0_i32 = arith.constant 0 : i32
    %c0_i32_0 = arith.constant 0 : i32
    %c0_i32_1 = arith.constant 0 : i32
    return %c0_i32, %c0_i32_0 : i32, i32
  }
  func.func @transform_3(%arg0: i32) -> (i32, i32) {
    %c0_i32 = arith.constant 0 : i32
    %c0_i32_0 = arith.constant 0 : i32
    %c0_i32_1 = arith.constant 0 : i32
    return %c0_i32, %c0_i32_0 : i32, i32
  }
  func.func @transform_4(%arg0: i32) -> (i32, i32) {
    %c0_i32 = arith.constant 0 : i32
    %c0_i32_0 = arith.constant 0 : i32
    %c0_i32_1 = arith.constant 0 : i32
    return %c0_i32, %c0_i32_0 : i32, i32
  }
  func.func @transform_5(%arg0: i32) -> (i32, i32) {
    %c0_i32 = arith.constant 0 : i32
    %c0_i32_0 = arith.constant 0 : i32
    %c0_i32_1 = arith.constant 0 : i32
    return %c0_i32, %c0_i32_0 : i32, i32
  }
  func.func @transform_6(%arg0: i32) -> (i32, i32) {
    %c0_i32 = arith.constant 0 : i32
    %c0_i32_0 = arith.constant 0 : i32
    %c0_i32_1 = arith.constant 0 : i32
    return %c0_i32, %c0_i32_0 : i32, i32
  }
  func.func @transform_7(%arg0: i32) -> (i32, i32) {
    %c0_i32 = arith.constant 0 : i32
    %c0_i32_0 = arith.constant 0 : i32
    return %arg0, %c0_i32 : i32, i32
  }
}

</mosaic_0001>

<bundles_post_ra>
// kernel: tpu_custom_call.1
= control target key start
LH: loop header
LB: loop body
LE: loop exit
PB: predicated region body
PF: predicated region fallthrough
CT: control target
= control target key end

     0   :  { %vm48_vm0 = vcmask 1045504   ;;  %v469_v0 = vmov 0.0   ;;  %vm49_vm1 = vcmask 1046528   ;;  %v470_v2 = vmov 65535   ;;  %s611_s0 = inlined_call_operand.vmem [shape: f32[8,13], index: 0, kind: input, shape index: {}]   ;;  %s612_s1 = inlined_call_operand.vmem [shape: bf16[13,128], index: 1, kind: input, shape index: {}]   ;;  %s613_s2 = inlined_call_operand.vmem [shape: f32[1,128], index: 2, kind: input, shape index: {}]   ;;  %s614_s3 = inlined_call_operand.vmem [shape: bf16[128,128], index: 3, kind: input, shape index: {}]   ;;  %s615_s4 = inlined_call_operand.vmem [shape: f32[1,128], index: 4, kind: input, shape index: {}]   ;;  %s616_s5 = inlined_call_operand.vmem [shape: bf16[128,105], index: 5, kind: input, shape index: {}]   ;;  %s617_s6 = inlined_call_operand.vmem [shape: f32[1,105], index: 6, kind: input, shape index: {}]   ;;  %s618_s7 = inlined_call_operand.hbm [shape: f32[8,105], index: 7, kind: output, shape index: {}]  }
   0x1   :  { %378 = vmatprep.subr.bf16.mxu0 %v469_v0  ;;  %v428_v1 = vld [vmem:[%s612_s1] sm:$0x7f]   ;;  %384 = vmatprep.subr.bf16.mxu1 %v469_v0  ;;  %v50_v3 = vsel %vm48_vm0, 4294967295, %v470_v2  ;;  %vm471_vm2 = vmmov 0   ;;  %v430_v9 = vld [vmem:[%s614_s3 + $0x8] sm:$0xff]   ;;  %vm44_vm3 = vcmask 105472  }
   0x2   :  { %380 = vmatprep.mubr.msk.bf16.mxu0 %vm471_vm2, %v469_v0  ;;  %v28_v4 = vld [vmem:[%s611_s0] sm:$0xff]  ;;  %400 = vmatprep.mubr.msk.bf16.mxu1 %vm471_vm2, %v469_v0  ;;  %v51_v5 = vsel %vm49_vm1, %v50_v3, 0  ;;  %v431_v10 = vld [vmem:[%s614_s3 + $0x10] sm:$0xff]   ;;  %v432_v11 = vld [vmem:[%s614_s3 + $0x18] sm:$0xff]  }
   0x3   :  { %v429_v6 = vld [vmem:[%s614_s3] sm:$0xff]   ;;  %v53_v7 = vand.u32 %v428_v1, %v51_v5  ;;  %v29_v8 = vpack.c.bf16 %v28_v4, %v28_v4 }
   0x4   :  { %385 = vmatpush3.bf16.msra.mxu1 %v429_v6 }
   0x5   :  { %379 = vmatpush3.bf16.msra.mxu0 %v53_v7  ;;  %386 = vmatprep.subr.bf16.mxu1 %v469_v0 }
   0x6   :  { %404 = vmatprep.subr.bf16.mxu0 %v469_v0 }
   0x8   :  { %381 = vmatmul.mubr.msk.bf16.vlgmr.msra.gmra.mrb[0].mxu0 %vm44_vm3, %v29_v8  ;;  %387 = vmatpush3.bf16.msra.mxu1 %v430_v9 }
   0x9   :  { %388 = vmatprep.subr.bf16.mxu1 %v469_v0  ;;  %420 = vmatprep.mubr.msk.bf16.mxu0 %vm471_vm2, %v469_v0 }
   0xc   :  { %389 = vmatpush3.bf16.msra.mxu1 %v431_v10 }
   0xd   :  { %390 = vmatprep.subr.bf16.mxu1 %v469_v0 }
   0xe   :  { %12 = vsyncpa [#allocation3], 0  ;;  %v433_v12 = vld [vmem:[%s614_s3 + $0x20] sm:$0xff]   ;;  %v434_v13 = vld [vmem:[%s614_s3 + $0x28] sm:$0xff]   ;;  %s472_s14 = smov [#allocation2]   ;;  %vm321_vm4 = vcmask 859136  }
   0xf   :  { %v435_v14 = vld [vmem:[%s614_s3 + $0x30] sm:$0xff]   ;;  %v436_v15 = vld [vmem:[%s614_s3 + $0x38] sm:$0xff]   ;;  %v437_v16 = vld [vmem:[%s616_s5] sm:$0xff]   ;;  %s329_s15 = sshll.u32 %s472_s14, 4  ;;  %s330_s15 = int_to_ptr.vmem [resolvable:$true] %s329_s15 }
  0x10   :  { %391 = vmatpush3.bf16.msra.mxu1 %v432_v11  ;;  %405 = vmatpush3.bf16.msra.mxu0 %v437_v16  ;;  %v438_v17 = vld [vmem:[%s616_s5 + $0x8] sm:$0xff]   ;;  %v439_v18 = vld [vmem:[%s616_s5 + $0x10] sm:$0xff]   ;;  %v440_v19 = vld [vmem:[%s616_s5 + $0x18] sm:$0xff]   ;;  %p450_p1 = scmp.lt.s32.totalorder %s330_s15, %s330_s15 }
  0x11   :  { %392 = vmatprep.subr.bf16.mxu1 %v469_v0  ;;  %406 = vmatprep.subr.bf16.mxu0 %v469_v0  ;;  %v441_v20 = vld [vmem:[%s616_s5 + $0x20] sm:$0xff]   ;;  %v442_v21 = vld [vmem:[%s616_s5 + $0x28] sm:$0xff]   ;;  %v443_v30 = vld [vmem:[%s616_s5 + $0x30] sm:$0xff]  }
  0x12   :  { %v337_v22 = vld [vmem:[%s613_s2] ss:$0 sm:$0xff]  ;;  %v444_v31 = vld [vmem:[%s616_s5 + $0x38] sm:$0xff]  }
  0x13   :  { %v340_v32 = vld [vmem:[%s615_s4] ss:$0 sm:$0xff]  ;;  %s445_s4 = scalar_lea.vmem %s330_s15, 128 }
  0x14   :  { %393 = vmatpush3.bf16.msra.mxu1 %v433_v12  ;;  %407 = vmatpush3.bf16.msra.mxu0 %v438_v17  ;;  %v349_v40 = vld [vmem:[%s617_s6] ss:$0 sm:$0xff]  ;;  %p446_p0 = scmp.ne.s32.totalorder %s330_s15, %s445_s4  ;;  %p451_p2 = scmp.lt.s32.totalorder %s445_s4, %s445_s4 }
  0x15   :  { %394 = vmatprep.subr.bf16.mxu1 %v469_v0  ;;  %408 = vmatprep.subr.bf16.mxu0 %v469_v0 }
  0x16   :  { %p452_p3 = por %p451_p2, %p450_p1 }
  0x18   :  { %395 = vmatpush3.bf16.msra.mxu1 %v434_v13  ;;  %409 = vmatpush3.bf16.msra.mxu0 %v439_v18  ;;  %p453_p4 = pnand %p452_p3, %p446_p0 }
  0x19   :  { %396 = vmatprep.subr.bf16.mxu1 %v469_v0  ;;  %410 = vmatprep.subr.bf16.mxu0 %v469_v0 }
  0x1c   :  { %397 = vmatpush3.bf16.msra.mxu1 %v435_v14  ;;  %411 = vmatpush3.bf16.msra.mxu0 %v440_v19 }
  0x1d   :  { %398 = vmatprep.subr.bf16.mxu1 %v469_v0  ;;  %412 = vmatprep.subr.bf16.mxu0 %v469_v0 }
  0x20   :  { %399 = vmatpush3.bf16.msra.mxu1 %v436_v15  ;;  %413 = vmatpush3.bf16.msra.mxu0 %v441_v20 }
  0x21   :  { %414 = vmatprep.subr.bf16.mxu0 %v469_v0 }
  0x24   :  { %415 = vmatpush3.bf16.msra.mxu0 %v442_v21 }
  0x25   :  { %416 = vmatprep.subr.bf16.mxu0 %v469_v0 }
  0x28   :  { %417 = vmatpush3.bf16.msra.mxu0 %v443_v30 }
  0x29   :  { %418 = vmatprep.subr.bf16.mxu0 %v469_v0 }
  0x2c   :  { %419 = vmatpush3.bf16.msra.mxu0 %v444_v31 }
  0xdb   :  { %v89_v23 = vpop.f32.mrb[0].mxu0 }
  0xdc   :  { %v90_v24 = vadd.f32 %v337_v22, %v89_v23  ;;  %v382_v25 = vpop.f32.mrb[1].mxu0 }
  0xdd   :  { %v92_v26 = vpop.f32.mrb[2].mxu0 }
  0xde   :  { %v95_v27 = vmax.f32 %v90_v24, 0.0  ;;  %v383_v28 = vpop.f32.mrb[3].mxu0 }
  0xe0   :  { %v96_v29 = vpack.c.bf16 %v95_v27, %v95_v27 }
  0xe2   :  { %401 = vmatmul.mubr.bf16.vlgmr.msra.gmra.mrb[0].mxu1 %v96_v29 }
 0x1b5   :  { %v202_v33 = vpop.f32.mrb[0].mxu1 }
 0x1b6   :  { %v203_v34 = vadd.f32 %v340_v32, %v202_v33  ;;  %v402_v35 = vpop.f32.mrb[1].mxu1 }
 0x1b7   :  { %v205_v36 = vpop.f32.mrb[2].mxu1 }
 0x1b8   :  { %v208_v37 = vmax.f32 %v203_v34, 0.0  ;;  %v403_v38 = vpop.f32.mrb[3].mxu1 }
 0x1ba   :  { %v209_v39 = vpack.c.bf16 %v208_v37, %v208_v37 }
 0x1bc   :  { %421 = vmatmul.mubr.bf16.vlgmr.msra.gmra.mrb[4].mxu0 %v209_v39 }
 0x28f   :  { %v315_v41 = vpop.f32.mrb[4].mxu0 }
 0x290   :  { %v316_v42 = vadd.f32 %v349_v40, %v315_v41  ;;  %v422_v43 = vpop.f32.mrb[5].mxu0 }
 0x291   :  { %v318_v44 = vpop.f32.mrb[6].mxu0 }
 0x292   :  { %v423_v45 = vpop.f32.mrb[7].mxu0  ;;  %322 = vst.msk [vmem:[#allocation2] sm:$0xff] %vm321_vm4, %v316_v42 }
 0x293   :  { %456 = shalt.err (!%p453_p4)
}
 0x294   :  { %s457_s6 = scalar_lea.hbm %s618_s7, 128 }
 0x295   :  { %p458_p5 = scmp.ne.s32.totalorder %s618_s7, %s457_s6  ;;  %p461_p6 = scmp.lt.u32.totalorder %s457_s6, %s618_s7 }
 0x297   :  { %p463_p7 = pnand %p461_p6, %p458_p5 }
 0x299   :  { %466 = shalt.err (!%p463_p7)
}
 0x29a   :  { %332 = dma.vmem_to_hbm [thread:$0]  %s330_s15, 128, %s618_s7, [#allocation3]  }
 0x29b   :  { %467 = dma.done.wait [#allocation3], 128  }
 0x29c   :  { %468 = vsyncadd [#allocation3], 4294967168 }
 0x29d   :  { %336 = vsyncpa [#allocation3], 1 }

</bundles_post_ra>
